<compile_context>
chip_gen: v6e
topology: v6e:2x2x1
jax: 0.10.0
libtpu: 0.0.40
codegen_flags: <defaults>
</compile_context>

<pallas_src>
import functools

import jax
import jax.numpy as jnp
from jax import lax
from jax.experimental import pallas as pl
from jax.experimental.pallas import tpu as pltpu


def _ge2e_kernel(x_ref, wb_ref, out_ref, *, S, G):
    eps = 1e-8                                    # F.cosine_similarity eps
    inv_eps = 1.0 / eps
    N = S * G

    w = wb_ref[0]                                 # trainable scale
    b = wb_ref[1]                                 # trainable bias

    xf = x_ref[...].astype(jnp.float32)           # (N, D)

    # ---- group indicators built in-kernel (iota only, no host tensors) ----
    # ind_sn[i, j] = 1 if utterance j belongs to speaker i            (S, N)
    row_sn = lax.broadcasted_iota(jnp.int32, (S, N), 0)
    col_sn = lax.broadcasted_iota(jnp.int32, (S, N), 1)
    s0 = row_sn * G
    ind_sn = ((col_sn >= s0) & (col_sn < s0 + G)).astype(jnp.float32)

    # is_diag[j, i] = True if row j's speaker is centroid column i    (N, S)
    row_ns = lax.broadcasted_iota(jnp.int32, (N, S), 0)
    col_ns = lax.broadcasted_iota(jnp.int32, (N, S), 1)
    c0 = col_ns * G
    is_diag = (row_ns >= c0) & (row_ns < c0 + G)
    ind_ns = is_diag.astype(jnp.float32)

    # ---- matmul 1: per-speaker group sums (MXU) ----
    sum_g = jnp.dot(ind_sn, xf, preferred_element_type=jnp.float32)        # (S, D)

    # ---- matmul 2 (back-to-back with matmul 1): raw inner products, normalization deferred.
    # D-vs-D contraction expressed directly -> no cen_n.T transpose on the critical path.
    raw = lax.dot_general(xf, sum_g,
                          dimension_numbers=(((1,), (1,)), ((), ())),
                          preferred_element_type=jnp.float32)              # (N, S)

    # ---- off-critical-path work that overlaps matmul 2 ----
    x_norm2 = jnp.sum(xf * xf, axis=-1, keepdims=True)                     # (N, 1)
    inv_x = jnp.minimum(lax.rsqrt(x_norm2), inv_eps)                       # 1/max(||x||,eps)
    sumg_norm2 = jnp.sum(sum_g * sum_g, axis=-1, keepdims=True)            # (S, 1)
    # matmul 3: gather ||sum_g_{spk(j)}||^2 per utterance (tiny (N,S)@(S,1) dot, overlaps MXU)
    sumg_n2_utt = jnp.dot(ind_ns, sumg_norm2,
                          preferred_element_type=jnp.float32)              # (N, 1)

    # ---- after matmul 2: diagonal extraction + column norms from the same masked tensor ----
    masked_raw = jnp.where(is_diag, raw, 0.0)                              # (N, S)
    raw_diag = jnp.sum(masked_raw, axis=-1, keepdims=True)                 # (N, 1) <x_j, sum_g_spk(j)>
    sumg_n2_row = jnp.sum(masked_raw, axis=0, keepdims=True)               # (1, S) ||sum_g_i||^2

    # off-diagonal cosines: cos(x_j, cen_i) with cen_i = sum_g_i / G
    inv_c = jnp.minimum(lax.rsqrt(sumg_n2_row) * G, inv_eps)               # (1, S) 1/max(||cen_i||,eps)
    cos_off = raw * (inv_x * (1.0 / G)) * inv_c                            # (N, S)

    # diagonal: cosine(x_j, exclusive centroid), exc never materialized
    dot_exc = (raw_diag - x_norm2) * (1.0 / (G - 1))                       # (N, 1) <x_j, exc_j>
    exc_n2 = (sumg_n2_utt - 2.0 * raw_diag + x_norm2) * (1.0 / ((G - 1) * (G - 1)))
    exc_n2 = jnp.maximum(exc_n2, 0.0)                                      # guard fp cancellation
    inv_e = jnp.minimum(lax.rsqrt(exc_n2), inv_eps)                        # (N, 1)
    diag_cos = dot_exc * inv_x * inv_e                                     # (N, 1)

    cos = jnp.where(is_diag, diag_cos, cos_off)
    cos = jnp.maximum(cos, 1e-6)                     # torch.clamp(cos_sim, 1e-6)
    logits = cos * w + b                             # (N, S)

    # ---- cross-entropy with implicit labels (label[j] = j // G), mean over N rows ----
    tgt_logit = jnp.maximum(diag_cos, 1e-6) * w + b                        # (N, 1)
    m = jnp.max(logits, axis=-1, keepdims=True)                            # (N, 1)
    lse = jnp.log(jnp.sum(jnp.exp(logits - m), axis=-1, keepdims=True)) + m

    # top-1 accuracy (%): target correct iff its logit equals the row max.
    # (exact logit ties counted as correct; indistinguishable for real-valued embeddings)
    correct = (tgt_logit >= m).astype(jnp.float32)                         # (N, 1)

    # ---- fused epilogue: one (N,2) pack, one sublane reduce, single (2,) SMEM output ----
    inv_n = 1.0 / N
    lane2 = lax.broadcasted_iota(jnp.int32, (N, 2), 1)
    contrib = jnp.where(lane2 == 0,
                        (lse - tgt_logit) * inv_n,          # per-row CE loss / N
                        correct * (100.0 * inv_n))          # per-row accuracy contribution
    red = jnp.sum(contrib, axis=0, keepdims=True)                          # (1, 2)
    lane_r = lax.broadcasted_iota(jnp.int32, (1, 2), 1)
    out_ref[0] = jnp.sum(jnp.where(lane_r == 0, red, 0.0))                 # nloss
    out_ref[1] = jnp.sum(jnp.where(lane_r == 1, red, 0.0))                 # prec1 (%)


def ge2e_loss(x, init_w=10.0, init_b=-5.0):
    """Returns (nloss, prec1) matching LossFunction.forward. init_w/init_b may be traced."""
    assert x.ndim == 3 and x.shape[1] >= 2
    S, G, D = x.shape
    N = S * G
    xf = x.reshape(N, D)                     # flatten in the wrapper; kernel stays fully 2D
    wb = jnp.stack([jnp.asarray(init_w, jnp.float32),
                    jnp.asarray(init_b, jnp.float32)])        # (2,) SMEM scalar params

    kernel = functools.partial(_ge2e_kernel, S=S, G=G)
    cost = pl.CostEstimate(
        flops=int(4 * N * S * D + 2 * N * S + 10 * N * D),
        transcendentals=int(N * S + 3 * N + S),
        bytes_accessed=int(N * D * x.dtype.itemsize + 16),
    )
    out = pl.pallas_call(
        kernel,
        out_shape=jax.ShapeDtypeStruct((2,), jnp.float32),
        in_specs=[pl.BlockSpec(memory_space=pltpu.MemorySpace.VMEM),
                  pl.BlockSpec(memory_space=pltpu.MemorySpace.SMEM)],
        out_specs=pl.BlockSpec(memory_space=pltpu.MemorySpace.SMEM),
        cost_estimate=cost,
    )(xf, wb)
    return out[0], out[1]


def _reference(x, init_w=10.0, init_b=-5.0):
    """Pure-JAX reference of the same math (sanity check)."""
    x = x.astype(jnp.float32)
    S, G, D = x.shape
    eps = 1e-8
    sum_g = jnp.sum(x, axis=1)
    cen = sum_g / G
    exc = (sum_g[:, None, :] - x) / (G - 1)
    x_n = jnp.maximum(jnp.linalg.norm(x, axis=-1), eps)
    c_n = jnp.maximum(jnp.linalg.norm(cen, axis=-1), eps)
    e_n = jnp.maximum(jnp.linalg.norm(exc, axis=-1), eps)
    cos = jnp.einsum('sgd,td->sgt', x, cen) / (x_n[:, :, None] * c_n[None, None, :])
    diag = jnp.sum(x * exc, -1) / (x_n * e_n)
    ii = jnp.arange(S)
    cos = cos.at[ii[:, None], jnp.arange(G)[None, :], ii[:, None]].set(diag)
    cos = jnp.maximum(cos, 1e-6)
    logits = (cos * init_w + init_b).reshape(S * G, S)
    labels = jnp.repeat(jnp.arange(S), G)
    logp = jax.nn.log_softmax(logits, axis=-1)
    loss = -jnp.mean(logp[jnp.arange(S * G), labels])
    prec = jnp.mean((jnp.argmax(logits, -1) == labels).astype(jnp.float32)) * 100.0
    return loss, prec


if __name__ == "__main__":
    key = jax.random.PRNGKey(0)
    S, G, D = 8, 4, 32          # stepsize=8 speakers, gsize=4 utterances, dim=32
    x = jax.random.normal(key, (S, G, D), dtype=jnp.float32)

    loss, prec = ge2e_loss(x)
    jax.block_until_ready((loss, prec))

    ref_loss, ref_prec = _reference(x)
    assert jnp.allclose(loss, ref_loss, rtol=1e-3, atol=1e-3), (loss, ref_loss)
    assert jnp.allclose(prec, ref_prec, rtol=1e-3, atol=1e-3), (prec, ref_prec)

    print("KERNEL_OK")
</pallas_src>

<mosaic_0001>
module attributes {stable_mosaic.version = 11 : i64} {
  func.func @_ge2e_kernel(%arg0: memref<32x32xf32, #tpu.memory_space<vmem>>, %arg1: memref<2xf32, #tpu.memory_space<smem>>, %arg2: memref<2xf32, #tpu.memory_space<smem>>) attributes {dimension_semantics = [], scalar_prefetch = 0 : i64, scratch_operands = 0 : i64, tpu.core_type = #tpu.core_type<tc>} {
    %c0 = arith.constant 0 : index
    %0 = memref.load %arg1[%c0] : memref<2xf32, #tpu.memory_space<smem>>
    %c1 = arith.constant 1 : index
    %1 = memref.load %arg1[%c1] : memref<2xf32, #tpu.memory_space<smem>>
    %c0_0 = arith.constant 0 : index
    %c0_1 = arith.constant 0 : index
    %2 = vector.load %arg0[%c0_0, %c0_1] : memref<32x32xf32, #tpu.memory_space<vmem>>, vector<32x32xf32>
    %3 = tpu.iota {dimensions = array<i32: 0>} : vector<8x32xi32>
    %4 = tpu.iota {dimensions = array<i32: 1>} : vector<8x32xi32>
    %c4_i32 = arith.constant 4 : i32
    %5 = vector.broadcast %c4_i32 : i32 to vector<8x32xi32>
    %6 = arith.muli %3, %5 : vector<8x32xi32>
    %7 = arith.cmpi sge, %4, %6 : vector<8x32xi32>
    %c4_i32_2 = arith.constant 4 : i32
    %8 = vector.broadcast %c4_i32_2 : i32 to vector<8x32xi32>
    %9 = arith.addi %6, %8 : vector<8x32xi32>
    %10 = arith.cmpi slt, %4, %9 : vector<8x32xi32>
    %11 = arith.andi %7, %10 : vector<8x32xi1>
    %12 = arith.extui %11 : vector<8x32xi1> to vector<8x32xi32>
    %13 = arith.sitofp %12 : vector<8x32xi32> to vector<8x32xf32>
    %14 = tpu.iota {dimensions = array<i32: 0>} : vector<32x8xi32>
    %15 = tpu.iota {dimensions = array<i32: 1>} : vector<32x8xi32>
    %c4_i32_3 = arith.constant 4 : i32
    %16 = vector.broadcast %c4_i32_3 : i32 to vector<32x8xi32>
    %17 = arith.muli %15, %16 : vector<32x8xi32>
    %18 = arith.cmpi sge, %14, %17 : vector<32x8xi32>
    %c4_i32_4 = arith.constant 4 : i32
    %19 = vector.broadcast %c4_i32_4 : i32 to vector<32x8xi32>
    %20 = arith.addi %17, %19 : vector<32x8xi32>
    %21 = arith.cmpi slt, %14, %20 : vector<32x8xi32>
    %22 = arith.andi %18, %21 : vector<32x8xi1>
    %23 = arith.extui %22 : vector<32x8xi1> to vector<32x8xi32>
    %24 = arith.sitofp %23 : vector<32x8xi32> to vector<32x8xf32>
    %cst = arith.constant dense<0.000000e+00> : vector<8x32xf32>
    %25 = tpu.matmul %13, %2, %cst {dimension_numbers = #tpu.dot_dimension_numbers<[1], [0], [0], [1], [0, 0, 1, 1], [], []>} : vector<8x32xf32>, vector<32x32xf32>, vector<8x32xf32> -> vector<8x32xf32>
    %cst_5 = arith.constant dense<0.000000e+00> : vector<32x8xf32>
    %26 = tpu.matmul %2, %25, %cst_5 {dimension_numbers = #tpu.dot_dimension_numbers<[1], [1], [0], [0], [0, 0, 1, 0], [], []>} : vector<32x32xf32>, vector<8x32xf32>, vector<32x8xf32> -> vector<32x8xf32>
    %27 = arith.mulf %2, %2 : vector<32x32xf32>
    %cst_6 = arith.constant dense<0.000000e+00> : vector<32xf32>
    %28 = vector.multi_reduction <add>, %27, %cst_6 [1] : vector<32x32xf32> to vector<32xf32>
    %29 = vector.shape_cast %28 : vector<32xf32> to vector<32x1xf32>
    %30 = math.rsqrt %29 : vector<32x1xf32>
    %cst_7 = arith.constant 1.000000e+08 : f32
    %31 = vector.broadcast %cst_7 : f32 to vector<32x1xf32>
    %32 = arith.minimumf %30, %31 : vector<32x1xf32>
    %33 = arith.mulf %25, %25 : vector<8x32xf32>
    %cst_8 = arith.constant dense<0.000000e+00> : vector<8xf32>
    %34 = vector.multi_reduction <add>, %33, %cst_8 [1] : vector<8x32xf32> to vector<8xf32>
    %35 = vector.shape_cast %34 : vector<8xf32> to vector<8x1xf32>
    %cst_9 = arith.constant dense<0.000000e+00> : vector<32x1xf32>
    %36 = tpu.matmul %24, %35, %cst_9 {dimension_numbers = #tpu.dot_dimension_numbers<[1], [0], [0], [1], [0, 0, 1, 1], [], []>} : vector<32x8xf32>, vector<8x1xf32>, vector<32x1xf32> -> vector<32x1xf32>
    %cst_10 = arith.constant 0.000000e+00 : f32
    %37 = vector.broadcast %cst_10 : f32 to vector<32x8xf32>
    %38 = arith.select %22, %26, %37 : vector<32x8xi1>, vector<32x8xf32>
    %cst_11 = arith.constant dense<0.000000e+00> : vector<32xf32>
    %39 = vector.multi_reduction <add>, %38, %cst_11 [1] : vector<32x8xf32> to vector<32xf32>
    %40 = vector.shape_cast %39 : vector<32xf32> to vector<32x1xf32>
    %cst_12 = arith.constant dense<0.000000e+00> : vector<8xf32>
    %41 = vector.multi_reduction <add>, %38, %cst_12 [0] : vector<32x8xf32> to vector<8xf32>
    %42 = vector.shape_cast %41 : vector<8xf32> to vector<1x8xf32>
    %43 = math.rsqrt %42 : vector<1x8xf32>
    %cst_13 = arith.constant 4.000000e+00 : f32
    %44 = vector.broadcast %cst_13 : f32 to vector<1x8xf32>
    %45 = arith.mulf %43, %44 : vector<1x8xf32>
    %cst_14 = arith.constant 1.000000e+08 : f32
    %46 = vector.broadcast %cst_14 : f32 to vector<1x8xf32>
    %47 = arith.minimumf %45, %46 : vector<1x8xf32>
    %cst_15 = arith.constant 2.500000e-01 : f32
    %48 = vector.broadcast %cst_15 : f32 to vector<32x1xf32>
    %49 = arith.mulf %32, %48 : vector<32x1xf32>
    %50 = vector.broadcast %49 : vector<32x1xf32> to vector<32x8xf32>
    %51 = arith.mulf %26, %50 : vector<32x8xf32>
    %52 = vector.broadcast %47 : vector<1x8xf32> to vector<32x8xf32>
    %53 = arith.mulf %51, %52 : vector<32x8xf32>
    %54 = arith.subf %40, %29 : vector<32x1xf32>
    %cst_16 = arith.constant 0.333333343 : f32
    %55 = vector.broadcast %cst_16 : f32 to vector<32x1xf32>
    %56 = arith.mulf %54, %55 : vector<32x1xf32>
    %cst_17 = arith.constant 2.000000e+00 : f32
    %57 = vector.broadcast %cst_17 : f32 to vector<32x1xf32>
    %58 = arith.mulf %57, %40 : vector<32x1xf32>
    %59 = arith.subf %36, %58 : vector<32x1xf32>
    %60 = arith.addf %59, %29 : vector<32x1xf32>
    %cst_18 = arith.constant 0.111111112 : f32
    %61 = vector.broadcast %cst_18 : f32 to vector<32x1xf32>
    %62 = arith.mulf %60, %61 : vector<32x1xf32>
    %cst_19 = arith.constant 0.000000e+00 : f32
    %63 = vector.broadcast %cst_19 : f32 to vector<32x1xf32>
    %64 = arith.maximumf %62, %63 : vector<32x1xf32>
    %65 = math.rsqrt %64 : vector<32x1xf32>
    %cst_20 = arith.constant 1.000000e+08 : f32
    %66 = vector.broadcast %cst_20 : f32 to vector<32x1xf32>
    %67 = arith.minimumf %65, %66 : vector<32x1xf32>
    %68 = arith.mulf %56, %32 : vector<32x1xf32>
    %69 = arith.mulf %68, %67 : vector<32x1xf32>
    %70 = vector.shape_cast %69 : vector<32x1xf32> to vector<32x1xf32>
    %71 = vector.broadcast %70 : vector<32x1xf32> to vector<32x8xf32>
    %72 = arith.select %22, %71, %53 : vector<32x8xi1>, vector<32x8xf32>
    %cst_21 = arith.constant 9.99999997E-7 : f32
    %73 = vector.broadcast %cst_21 : f32 to vector<32x8xf32>
    %74 = arith.maximumf %72, %73 : vector<32x8xf32>
    %75 = vector.broadcast %0 : f32 to vector<32x8xf32>
    %76 = arith.mulf %74, %75 : vector<32x8xf32>
    %77 = vector.broadcast %1 : f32 to vector<32x8xf32>
    %78 = arith.addf %76, %77 : vector<32x8xf32>
    %cst_22 = arith.constant 9.99999997E-7 : f32
    %79 = vector.broadcast %cst_22 : f32 to vector<32x1xf32>
    %80 = arith.maximumf %69, %79 : vector<32x1xf32>
    %81 = vector.broadcast %0 : f32 to vector<32x1xf32>
    %82 = arith.mulf %80, %81 : vector<32x1xf32>
    %83 = vector.broadcast %1 : f32 to vector<32x1xf32>
    %84 = arith.addf %82, %83 : vector<32x1xf32>
    %cst_23 = arith.constant dense<0xFF800000> : vector<32xf32>
    %85 = vector.multi_reduction <maximumf>, %78, %cst_23 [1] : vector<32x8xf32> to vector<32xf32>
    %86 = vector.shape_cast %85 : vector<32xf32> to vector<32x1xf32>
    %87 = vector.broadcast %86 : vector<32x1xf32> to vector<32x8xf32>
    %88 = arith.subf %78, %87 : vector<32x8xf32>
    %89 = math.exp %88 : vector<32x8xf32>
    %cst_24 = arith.constant dense<0.000000e+00> : vector<32xf32>
    %90 = vector.multi_reduction <add>, %89, %cst_24 [1] : vector<32x8xf32> to vector<32xf32>
    %91 = vector.shape_cast %90 : vector<32xf32> to vector<32x1xf32>
    %92 = math.log %91 : vector<32x1xf32>
    %93 = arith.addf %92, %86 : vector<32x1xf32>
    %94 = arith.cmpf oge, %84, %86 : vector<32x1xf32>
    %95 = arith.extui %94 : vector<32x1xi1> to vector<32x1xi32>
    %96 = arith.sitofp %95 : vector<32x1xi32> to vector<32x1xf32>
    %97 = tpu.iota {dimensions = array<i32: 1>} : vector<32x2xi32>
    %c0_i32 = arith.constant 0 : i32
    %98 = vector.broadcast %c0_i32 : i32 to vector<32x2xi32>
    %99 = arith.cmpi eq, %97, %98 : vector<32x2xi32>
    %100 = arith.subf %93, %84 : vector<32x1xf32>
    %cst_25 = arith.constant 3.125000e-02 : f32
    %101 = vector.broadcast %cst_25 : f32 to vector<32x1xf32>
    %102 = arith.mulf %100, %101 : vector<32x1xf32>
    %cst_26 = arith.constant 3.125000e+00 : f32
    %103 = vector.broadcast %cst_26 : f32 to vector<32x1xf32>
    %104 = arith.mulf %96, %103 : vector<32x1xf32>
    %105 = vector.shape_cast %102 : vector<32x1xf32> to vector<32x1xf32>
    %106 = vector.broadcast %105 : vector<32x1xf32> to vector<32x2xf32>
    %107 = vector.shape_cast %104 : vector<32x1xf32> to vector<32x1xf32>
    %108 = vector.broadcast %107 : vector<32x1xf32> to vector<32x2xf32>
    %109 = arith.select %99, %106, %108 : vector<32x2xi1>, vector<32x2xf32>
    %cst_27 = arith.constant dense<0.000000e+00> : vector<2xf32>
    %110 = vector.multi_reduction <add>, %109, %cst_27 [0] : vector<32x2xf32> to vector<2xf32>
    %111 = vector.shape_cast %110 : vector<2xf32> to vector<1x2xf32>
    %112 = tpu.iota {dimensions = array<i32: 1>} : vector<1x2xi32>
    %c0_i32_28 = arith.constant 0 : i32
    %113 = vector.broadcast %c0_i32_28 : i32 to vector<1x2xi32>
    %114 = arith.cmpi eq, %112, %113 : vector<1x2xi32>
    %cst_29 = arith.constant 0.000000e+00 : f32
    %115 = vector.broadcast %cst_29 : f32 to vector<1x2xf32>
    %116 = arith.select %114, %111, %115 : vector<1x2xi1>, vector<1x2xf32>
    %117 = vector.shape_cast %116 : vector<1x2xf32> to vector<1x1x2xf32>
    %cst_30 = arith.constant dense<0.000000e+00> : vector<1xf32>
    %118 = vector.multi_reduction <add>, %117, %cst_30 [1, 2] : vector<1x1x2xf32> to vector<1xf32>
    %119 = vector.shape_cast %118 : vector<1xf32> to vector<1x1x1xf32>
    %120 = vector.extract %119[0, 0, 0] : f32 from vector<1x1x1xf32>
    %c0_31 = arith.constant 0 : index
    %121 = memref.load %arg2[%c0_31] : memref<2xf32, #tpu.memory_space<smem>>
    memref.store %120, %arg2[%c0_31] : memref<2xf32, #tpu.memory_space<smem>>
    %c1_i32 = arith.constant 1 : i32
    %122 = vector.broadcast %c1_i32 : i32 to vector<1x2xi32>
    %123 = arith.cmpi eq, %112, %122 : vector<1x2xi32>
    %cst_32 = arith.constant 0.000000e+00 : f32
    %124 = vector.broadcast %cst_32 : f32 to vector<1x2xf32>
    %125 = arith.select %123, %111, %124 : vector<1x2xi1>, vector<1x2xf32>
    %126 = vector.shape_cast %125 : vector<1x2xf32> to vector<1x1x2xf32>
    %cst_33 = arith.constant dense<0.000000e+00> : vector<1xf32>
    %127 = vector.multi_reduction <add>, %126, %cst_33 [1, 2] : vector<1x1x2xf32> to vector<1xf32>
    %128 = vector.shape_cast %127 : vector<1xf32> to vector<1x1x1xf32>
    %129 = vector.extract %128[0, 0, 0] : f32 from vector<1x1x1xf32>
    %c1_34 = arith.constant 1 : index
    %130 = memref.load %arg2[%c1_34] : memref<2xf32, #tpu.memory_space<smem>>
    memref.store %129, %arg2[%c1_34] : memref<2xf32, #tpu.memory_space<smem>>
    return
  }
}

</mosaic_0001>

<bundles_post_ra>
// kernel: tpu_custom_call.1
= control target key start
LH: loop header
LB: loop body
LE: loop exit
PB: predicated region body
PF: predicated region fallthrough
CT: control target
= control target key end

     0   :  { %7 = vsyncpa [#allocation3], 0  ;;  %s1074_s0 = inlined_call_operand.hbm [shape: f32[32,32], index: 0, kind: input, shape index: {}]   ;;  %s1075_s1 = inlined_call_operand.vmem [shape: f32[2], index: 1, kind: input, shape index: {}]   ;;  %s1076_s2 = inlined_call_operand.hbm [shape: f32[2], index: 2, kind: output, shape index: {}]  }
   0x1   :  { %8 = vsyncpa [#allocation5], 0 }
   0x2   :  { %9 = vsyncpa [#allocation4], 0  ;;  %s847_s9 = smov [#allocation2]   ;;  %s28_s13 = sshll.u32 %s1075_s1, 4  ;;  %s29_s13 = int_to_ptr.vmem [resolvable:$true] %s28_s13 }
   0x3   :  { %s15_s10 = sshll.u32 %s847_s9, 4  ;;  %s16_s10 = int_to_ptr.vmem [resolvable:$true] %s15_s10 }
   0x4   :  { %s809_s14 = scalar_lea.vmem %s16_s10, 512  ;;  %p814_p1 = scmp.lt.s32.totalorder %s16_s10, %s16_s10 }
   0x5   :  { %p810_p0 = scmp.ne.s32.totalorder %s16_s10, %s809_s14  ;;  %p815_p2 = scmp.lt.s32.totalorder %s809_s14, %s809_s14 }
   0x7   :  { %p816_p3 = por %p815_p2, %p814_p1 }
   0x9   :  { %p817_p4 = pnand %p816_p3, %p810_p0 }
   0xb   :  { %820 = shalt.err (!%p817_p4)
}
   0xc   :  { %s848_s15 = smov 128   ;;  %s849_s16 = smov 8  }
   0xd   :  { %21 = dma.hbm_to_vmem [thread:$0]  %s1074_s0, 512, %s16_s10, [#allocation3], %s848_s15, %s848_s15, %s849_s16  }
   0xe   :  { %s821_s19 = scalar_lea.vmem %s29_s13, 16  ;;  %p826_p6 = scmp.lt.s32.totalorder %s29_s13, %s29_s13 }
   0xf   :  { %p822_p5 = scmp.ne.s32.totalorder %s29_s13, %s821_s19  ;;  %p827_p7 = scmp.lt.s32.totalorder %s821_s19, %s821_s19 }
  0x11   :  { %p828_p8 = por %p827_p7, %p826_p6 }
  0x13   :  { %p829_p9 = pnand %p828_p8, %p822_p5 }
  0x15   :  { %832 = shalt.err (!%p829_p9)
}
  0x16   :  { %s850_s1 = smov [#allocation6]  }
  0x17   :  { %31 = dma.vmem_to_smem %s29_s13, 16, %s850_s1, [#allocation5]  }
  0x18   :  { %841 = dma.done.wait [#allocation3], 512  }
  0x19   :  { %842 = vsyncadd [#allocation3], 4294966784 }
  0x1a   :  { %843 = dma.done.wait [#allocation5], 16  }
  0x1b   :  { %844 = vsyncadd [#allocation5], 4294967280 }
  0x1c   :  { %38 = sfence }
  0x1d   :  { %v876_v0 = vld [vmem:[#allocation2 + $0x18] sm:$0xff]  ;;  %v45_v1 = vlaneseq  ;;  %v851_v2 = vmov 0.0   ;;  %v879_v3 = vld [vmem:[#allocation2 + $0x10] sm:$0xff]  ;;  %v41_v4 = vld [vmem:[#allocation2] sm:$0xff]  ;;  %vm852_vm0 = vmmov 0   ;;  %vm81_vm1 = vcmask 261120  }
  0x1e   :  { %724 = vmatprep.subr.mxu0 %v851_v2  ;;  %732 = vmatprep.mubr.msk.f32.mxu0 %vm852_vm0, %v851_v2  ;;  %v42_v7 = vld [vmem:[#allocation2 + $0x8] sm:$0xff]  ;;  %v255_v15 = vmul.f32 %v41_v4, %v41_v4  ;;  %vm283_vm10 = vcmask 64512   ;;  %v258_v44 = vmul.f32 %v876_v0, %v876_v0  ;;  %v257_v45 = vmul.f32 %v879_v3, %v879_v3  ;;  %s39_s0 = sld [smem:[#allocation6]]  ;;  %s854_s23 = smov [#allocation7]  }
  0x1f   :  { %725 = vmatpush3.msra.mxu0 %v876_v0  ;;  %v46_v5 = vshrl.u32 %v45_v1, 7  ;;  %v883_v6 = vand.u32 127, %v45_v1  ;;  %737 = vmatprep.mubr.msk.f32.mxu1 %vm81_vm1, %v41_v4  ;;  %v256_v11 = vmul.f32 %v42_v7, %v42_v7  ;;  %s689_s20 = sld [smem:[#allocation6 + $0x1]] }
  0x20   :  { %726 = vmatprep.subr.mxu0 %v851_v2  ;;  %v259_v18 = vsel %vm81_vm1, %v255_v15, 0.0  ;;  %v268_v49 = vsel %vm81_vm1, %v258_v44, 0.0  ;;  %v265_v50 = vsel %vm81_vm1, %v257_v45, 0.0 }
  0x21   :  { %727 = vmatpush3.msra.mxu0 %v879_v3  ;;  %v49_v8 = vmul.u32 4, %v46_v5  ;;  %v262_v12 = vsel %vm81_vm1, %v256_v11, 0.0  ;;  %v59_v19 = vmul.u32 4, %v883_v6  ;;  %v56_v21 = vadd.s32 8, %v46_v5 }
  0x22   :  { %728 = vmatprep.subr.mxu0 %v851_v2  ;;  %263 = vadd.xlane.f32.xlu1 %v262_v12  ;;  %v57_v25 = vadd.s32 16, %v46_v5  ;;  %v58_v26 = vadd.s32 24, %v46_v5 }
  0x23   :  { %729 = vmatpush3.msra.mxu0 %v42_v7  ;;  %vm50_vm2 = vcmp.ge.s32.totalorder %v883_v6, %v49_v8  ;;  %v51_v9 = vadd.s32 4, %v49_v8  ;;  %v64_v20 = vadd.s32 4, %v59_v19  ;;  %vm60_vm5 = vcmp.ge.s32.totalorder %v46_v5, %v59_v19 }
  0x24   :  { %730 = vmatprep.subr.mxu0 %v851_v2  ;;  %vm61_vm8 = vcmp.ge.s32.totalorder %v56_v21, %v59_v19  ;;  %vm62_vm12 = vcmp.ge.s32.totalorder %v57_v25, %v59_v19  ;;  %vm63_vm14 = vcmp.ge.s32.totalorder %v58_v26, %v59_v19 }
  0x25   :  { %731 = vmatpush3.msra.mxu0 %v41_v4  ;;  %vm52_vm3 = vcmp.lt.s32.totalorder %v883_v6, %v51_v9  ;;  %vm65_vm6 = vcmp.lt.s32.totalorder %v46_v5, %v64_v20  ;;  %vm66_vm9 = vcmp.lt.s32.totalorder %v56_v21, %v64_v20  ;;  %vm67_vm13 = vcmp.lt.s32.totalorder %v57_v25, %v64_v20 }
  0x26   :  { %vm53_vm4 = vmand %vm50_vm2, %vm52_vm3  ;;  %vm68_vm15 = vcmp.lt.s32.totalorder %v58_v26, %v64_v20  ;;  %v853_v9 = vmov 0  }
  0x27   :  { %v690_v10 = vsel %vm53_vm4, 1.0, %v851_v2  ;;  %vm905_vm7 = vmand %vm60_vm5, %vm65_vm6  ;;  %765 = vset.pattern.permute.xlu0 %v853_v9  ;;  %766 = vset.pattern.permute.xlu1 %v853_v9  ;;  %vm575_vm6 = vcmp.eq.s32.totalorder %v883_v6, 0 }
  0x28   :  { %733 = vmatmul.mubr.msk.f32.vlgmr.msra.gmra.mxu0 %vm81_vm1, %v690_v10  ;;  %v691_v23 = vsel %vm905_vm7, 1.0, %v851_v2  ;;  %vm912_vm11 = vmand %vm61_vm8, %vm66_vm9  ;;  %vm660_vm8 = vcmp.eq.s32.totalorder %v883_v6, 1  ;;  %vm647_vm9 = vcmask 8192  }
  0x29   :  { %745 = vmatprep.mubr.msk.f32.mxu0 %vm283_vm10, %v691_v23  ;;  %vm917_vm0 = vmand %vm62_vm12, %vm67_vm13  ;;  %v692_v31 = vsel %vm912_vm11, 1.0, %v851_v2 }
  0x2a   :  { %v693_v28 = vsel %vm917_vm0, 1.0, %v851_v2  ;;  %vm924_vm2 = vmand %vm63_vm14, %vm68_vm15 }
  0x2b   :  { %v694_v32 = vsel %vm924_vm2, 1.0, %v851_v2 }
  0xab   :  { %v961_v52 = vpop.xlane.xlu1 %263 }
  0xac   :  { %767 = vrsqrt.f32 %v961_v52 }
  0xb9   :  { %v768_v60 = vpop.eup %767 }
  0xba   :  { %v276_v62 = vmin.f32 %v768_v60, 1e+08 }
  0xe8   :  { %v151_v13 = vpop.f32.mrf.mxu0 }
  0xe9   :  { %735 = vmatprep.subr.msk.mxu1 %vm81_vm1, %v151_v13  ;;  %v279_v14 = vmul.f32 %v151_v13, %v151_v13 }
  0xea   :  { %v734_v16 = vpop.f32.mrf.mxu0  ;;  %736 = vmatpush3.xpose.msk.msra.mxu1 %vm81_vm1, %v151_v13 }
  0xeb   :  { %v280_v17 = vsel %vm81_vm1, %v279_v14, 0.0 }
  0xec   :  { %281 = vadd.xlane.f32.xlu0 %v280_v17 }
  0xed   :  { %738 = vmatmul.mubr.msk.f32.vlgmr.msra.gmra.mxu1 %vm81_vm1, %v42_v7 }
  0xee   :  { %740 = vmatprep.mubr.msk.f32.mxu1 %vm81_vm1, %v879_v3 }
  0xf0   :  { %260 = vadd.xlane.f32.xlu0 %v259_v18 }
  0xf1   :  { %741 = vmatmul.mubr.msk.f32.gmra.mxu1 %vm81_vm1, %v876_v0  ;;  %v410_v0 = vmul.f32 0.25, %v276_v62 }
  0xf2   :  { %748 = vmatprep.mubr.msk.f32.mxu1 %vm283_vm10, %v693_v28 }
 0x175   :  { %v282_v30 = vpop.xlane.xlu0 %281 }
 0x176   :  { %743 = vmatprep.subr.mxu0 %v282_v30  ;;  %751 = vmatprep.subr.mxu1 %v282_v30 }
 0x177   :  { %744 = vmatpush3.msra.mxu0 %v282_v30  ;;  %752 = vmatpush3.msra.mxu1 %v282_v30 }
 0x178   :  { %746 = vmatmul.mubr.msk.f32.vlgmr.msra.gmra.mxu0 %vm283_vm10, %v692_v31  ;;  %749 = vmatmul.mubr.msk.f32.vlgmr.msra.gmra.mxu1 %vm283_vm10, %v694_v32 }
 0x179   :  { %v963_v54 = vpop.xlane.xlu0 %260 }
 0x17a   :  { %769 = vrsqrt.f32 %v963_v54 }
 0x187   :  { %v967_v61 = vpop.eup %769 }
 0x188   :  { %v275_v63 = vmin.f32 %v967_v61, 1e+08 }
 0x18a   :  { %v409_v1 = vmul.f32 0.25, %v275_v63 }
 0x1ad   :  { %v739_v33 = vpop.f32.mrf.mxu1 }
 0x1ae   :  { %v382_v34 = vsel %vm912_vm11, %v739_v33, 0.0  ;;  %v414_v5 = vmul.f32 %v739_v33, %v410_v0 }
 0x1af   :  { %v236_v35 = vpop.f32.mrf.mxu1  ;;  %v388_v36 = vsel %vm283_vm10, %v382_v34, 0.0 }
 0x1b0   :  { %389 = vadd.xlane.f32.xlu1 %v388_v36  ;;  %v381_v37 = vsel %vm905_vm7, %v236_v35, 0.0  ;;  %v413_v7 = vmul.f32 %v409_v1, %v236_v35 }
 0x1b1   :  { %v942_v38 = vpop.f32.mrf.mxu1  ;;  %v385_v39 = vsel %vm283_vm10, %v381_v37, 0.0 }
 0x1b2   :  { %386 = vadd.xlane.f32.xlu0 %v385_v39  ;;  %v397_v40 = vadd.f32 %v388_v36, %v385_v39  ;;  %v384_v41 = vsel %vm924_vm2, %v942_v38, 0.0 }
 0x1b3   :  { %v948_v42 = vpop.f32.mrf.mxu1  ;;  %v394_v43 = vsel %vm283_vm10, %v384_v41, 0.0 }
 0x1b4   :  { %v383_v46 = vsel %vm917_vm0, %v948_v42, 0.0 }
 0x1b5   :  { %v391_v47 = vsel %vm283_vm10, %v383_v46, 0.0 }
 0x1b6   :  { %395 = vadd.xlane.f32.xlu0 %v394_v43  ;;  %392 = vadd.xlane.f32.xlu1 %v391_v47  ;;  %v398_v48 = vadd.f32 %v397_v40, %v391_v47 }
 0x1b8   :  { %v399_v51 = vadd.f32 %v398_v48, %v394_v43 }
 0x1ba   :  { %v400_v53 = vrot.slane %v399_v51, 4  ;;  %269 = vadd.xlane.f32.xlu0 %v268_v49  ;;  %266 = vadd.xlane.f32.xlu1 %v265_v50 }
 0x1bc   :  { %v401_v55 = vadd.f32 %v400_v53, %v399_v51 }
 0x1be   :  { %v402_v56 = vrot.slane %v401_v55, 2 }
 0x1c0   :  { %v403_v57 = vadd.f32 %v402_v56, %v401_v55 }
 0x1c2   :  { %v404_v58 = vrot.slane %v403_v57, 1 }
 0x1c4   :  { %v405_v59 = vadd.f32 %v404_v58, %v403_v57 }
 0x1c6   :  { %771 = vrsqrt.f32 %v405_v59 }
 0x1d3   :  { %v772_v3 = vpop.eup %771 }
 0x1d4   :  { %v407_v4 = vmul.f32 4.0, %v772_v3 }
 0x1d6   :  { %v970_v8 = vmin.f32 %v407_v4, 1e+08 }
 0x1d8   :  { %v973_v10 = vmul.f32 %v414_v5, %v970_v8  ;;  %v976_v11 = vmul.f32 %v413_v7, %v970_v8 }
 0x238   :  { %v747_v13 = vpop.f32.mrf.mxu0  ;;  %v750_v18 = vpop.f32.mrf.mxu1 }
 0x239   :  { %v390_v12 = vpop.xlane.xlu1 %389 }
 0x23a   :  { %v430_v14 = vmul.f32 2.0, %v390_v12  ;;  %v362_v19 = vpop.f32.mrf.mxu0  ;;  %v372_v31 = vpop.f32.mrf.mxu1  ;;  %v422_v48 = vsub.f32 %v390_v12, %v961_v52 }
 0x23b   :  { %v387_v15 = vpop.xlane.xlu0 %386 }
 0x23c   :  { %v434_v16 = vsub.f32 %v747_v13, %v430_v14  ;;  %v429_v17 = vmul.f32 2.0, %v387_v15  ;;  %v421_v49 = vsub.f32 %v387_v15, %v963_v54  ;;  %v426_v50 = vmul.f32 0.33333334, %v422_v48 }
 0x23e   :  { %v438_v20 = vadd.f32 %v434_v16, %v961_v52  ;;  %v433_v21 = vsub.f32 %v362_v19, %v429_v17  ;;  %v425_v51 = vmul.f32 0.33333334, %v421_v49  ;;  %v458_v56 = vmul.f32 %v426_v50, %v276_v62 }
 0x23f   :  { %v396_v23 = vpop.xlane.xlu0 %395  ;;  %v393_v25 = vpop.xlane.xlu1 %392 }
 0x240   :  { %v442_v26 = vmul.f32 0.11111111, %v438_v20  ;;  %v437_v28 = vadd.f32 %v433_v21, %v963_v54  ;;  %v432_v30 = vmul.f32 2.0, %v396_v23  ;;  %v431_v32 = vmul.f32 2.0, %v393_v25 }
 0x241   :  { %v457_v0 = vmul.f32 %v425_v51, %v275_v63 }
 0x242   :  { %v446_v33 = vmax.f32 %v442_v26, 0.0  ;;  %v441_v34 = vmul.f32 0.11111111, %v437_v28  ;;  %v436_v35 = vsub.f32 %v750_v18, %v432_v30  ;;  %v435_v36 = vsub.f32 %v372_v31, %v431_v32 }
 0x243   :  { %v270_v37 = vpop.xlane.xlu0 %269  ;;  %v267_v39 = vpop.xlane.xlu1 %266  ;;  %v1001_v28 = vstv %s39_s0  ;;  %v1007_v32 = vstv %s689_s20 }
 0x244   :  { %773 = vrsqrt.f32 %v446_v33  ;;  %v445_v40 = vmax.f32 %v441_v34, 0.0  ;;  %v440_v41 = vadd.f32 %v436_v35, %v270_v37  ;;  %v439_v43 = vadd.f32 %v435_v36, %v267_v39 }
 0x245   :  { %775 = vrsqrt.f32 %v270_v37  ;;  %v423_v60 = vsub.f32 %v393_v25, %v267_v39  ;;  %v424_v7 = vsub.f32 %v396_v23, %v270_v37 }
 0x246   :  { %777 = vrsqrt.f32 %v445_v40  ;;  %v444_v44 = vmul.f32 0.11111111, %v440_v41  ;;  %v443_v45 = vmul.f32 0.11111111, %v439_v43 }
 0x247   :  { %779 = vrsqrt.f32 %v267_v39  ;;  %v427_v12 = vmul.f32 0.33333334, %v423_v60  ;;  %v428_v17 = vmul.f32 0.33333334, %v424_v7 }
 0x248   :  { %v448_v46 = vmax.f32 %v444_v44, 0.0  ;;  %v447_v47 = vmax.f32 %v443_v45, 0.0 }
 0x24a   :  { %781 = vrsqrt.f32 %v448_v46 }
 0x24b   :  { %783 = vrsqrt.f32 %v447_v47 }
 0x251   :  { %v774_v53 = vpop.eup %773 }
 0x252   :  { %v776_v55 = vpop.eup %775  ;;  %v454_v57 = vmin.f32 %v774_v53, 1e+08 }
 0x253   :  { %v778_v58 = vpop.eup %777  ;;  %v278_v59 = vmin.f32 %v776_v55, 1e+08 }
 0x254   :  { %v780_v61 = vpop.eup %779  ;;  %v982_v1 = vmul.f32 %v458_v56, %v454_v57  ;;  %v453_v3 = vmin.f32 %v778_v58, 1e+08 }
 0x255   :  { %v412_v4 = vmul.f32 0.25, %v278_v59  ;;  %v277_v52 = vmin.f32 %v780_v61, 1e+08  ;;  %v460_v21 = vmul.f32 %v428_v17, %v278_v59 }
 0x256   :  { %472 = vperm.xlu0 %765, %v982_v1   ;;  %v985_v5 = vmul.f32 %v457_v0, %v453_v3 }
 0x257   :  { %v782_v54 = vpop.eup %781  ;;  %v411_v9 = vmul.f32 0.25, %v277_v52  ;;  %v416_v62 = vmul.f32 %v942_v38, %v412_v4  ;;  %v459_v63 = vmul.f32 %v427_v12, %v277_v52  ;;  %v504_v12 = vmax.f32 %v982_v1, 1e-06 }
 0x258   :  { %v784_v13 = vpop.eup %783  ;;  %467 = vperm.xlu1 %766, %v985_v5   ;;  %v456_v19 = vmin.f32 %v782_v54, 1e+08  ;;  %v503_v52 = vmax.f32 %v985_v5, 1e-06 }
 0x259   :  { %v455_v14 = vmin.f32 %v784_v13, 1e+08  ;;  %v415_v15 = vmul.f32 %v411_v9, %v948_v42  ;;  %v420_v16 = vmul.f32 %v416_v62, %v970_v8 }
 0x25a   :  { %v995_v23 = vmul.f32 %v460_v21, %v456_v19  ;;  %v507_v62 = vmul.f32 %v503_v52, %v1001_v28 }
 0x25b   :  { %v991_v18 = vmul.f32 %v459_v63, %v455_v14  ;;  %v419_v20 = vmul.f32 %v415_v15, %v970_v8  ;;  %v508_v14 = vmul.f32 %v504_v12, %v1001_v28 }
 0x25c   :  { %v511_v63 = vadd.f32 %v507_v62, %v1007_v32 }
 0x25d   :  { %477 = vperm.xlu1 %766, %v991_v18   ;;  %v505_v13 = vmax.f32 %v991_v18, 1e-06  ;;  %v512_v5 = vadd.f32 %v508_v14, %v1007_v32 }
 0x25f   :  { %v509_v15 = vmul.f32 %v505_v13, %v1001_v28 }
 0x261   :  { %482 = vperm.xlu1 %766, %v995_v23   ;;  %v513_v1 = vadd.f32 %v509_v15, %v1007_v32 }
 0x2d1   :  { %v473_v38 = vpop.permute.xlu0 %472 }
 0x2d2   :  { %v486_v42 = vsel %vm912_vm11, %v473_v38, %v973_v10 }
 0x2d3   :  { %v490_v25 = vmax.f32 %v486_v42, 1e-06  ;;  %v468_v26 = vpop.permute.xlu1 %467 }
 0x2d4   :  { %v485_v8 = vsel %vm905_vm7, %v468_v26, %v976_v11  ;;  %vm632_vm7 = vcmask 15360  }
 0x2d5   :  { %v495_v30 = vmul.f32 %v1001_v28, %v490_v25  ;;  %v489_v31 = vmax.f32 %v485_v8, 1e-06  ;;  %v506_v8 = vmax.f32 %v995_v23, 1e-06 }
 0x2d7   :  { %v494_v33 = vmul.f32 %v1001_v28, %v489_v31  ;;  %v500_v34 = vadd.f32 %v1007_v32, %v495_v30 }
 0x2d8   :  { %v478_v35 = vpop.permute.xlu1 %477 }
 0x2d9   :  { %v487_v24 = vsel %vm917_vm0, %v478_v35, %v419_v20  ;;  %v518_v10 = vsel %vm283_vm10, %v500_v34, -inf  ;;  %v499_v36 = vadd.f32 %v1007_v32, %v494_v33  ;;  %v510_v33 = vmul.f32 %v506_v8, %v1001_v28 }
 0x2da   :  { %v491_v37 = vmax.f32 %v487_v24, 1e-06  ;;  %519 = vmax.xlane.f32.xlu0 %v518_v10 }
 0x2db   :  { %v515_v22 = vsel %vm283_vm10, %v499_v36, -inf }
 0x2dc   :  { %v496_v11 = vmul.f32 %v1001_v28, %v491_v37  ;;  %v483_v39 = vpop.permute.xlu1 %482  ;;  %516 = vmax.xlane.f32.xlu1 %v515_v22 }
 0x2dd   :  { %v488_v40 = vsel %vm924_vm2, %v483_v39, %v420_v16 }
 0x2de   :  { %v492_v41 = vmax.f32 %v488_v40, 1e-06  ;;  %v501_v43 = vadd.f32 %v1007_v32, %v496_v11 }
 0x2e0   :  { %v497_v27 = vmul.f32 %v1001_v28, %v492_v41  ;;  %v521_v44 = vsel %vm283_vm10, %v501_v43, -inf }
 0x2e1   :  { %522 = vmax.xlane.f32.xlu1 %v521_v44 }
 0x2e2   :  { %v502_v45 = vadd.f32 %v1007_v32, %v497_v27 }
 0x2e4   :  { %v524_v46 = vsel %vm283_vm10, %v502_v45, -inf }
 0x2e5   :  { %525 = vmax.xlane.f32.xlu1 %v524_v46 }
 0x363   :  { %v520_v47 = vpop.xlane.xlu0 %519 }
 0x364   :  { %v528_v48 = vsub.f32 %v500_v34, %v520_v47  ;;  %vm564_vm3 = vcmp.ge.f32.partialorder %v512_v5, %v520_v47 }
 0x365   :  { %v1024_v49 = vpop.xlane.xlu1 %516  ;;  %v706_v19 = vsel %vm564_vm3, 1.0, %v851_v2 }
 0x366   :  { %v533_v50 = vmul.f32 1.442695, %v528_v48  ;;  %v527_v29 = vsub.f32 %v499_v36, %v1024_v49  ;;  %vm563_vm1 = vcmp.ge.f32.partialorder %v511_v63, %v1024_v49  ;;  %v585_v18 = vmul.f32 3.125, %v706_v19 }
 0x367   :  { %v705_v16 = vsel %vm563_vm1, 1.0, %v851_v2  ;;  %v514_v36 = vadd.f32 %v510_v33, %v1007_v32 }
 0x368   :  { %785 = vpow2.f32 %v533_v50  ;;  %v531_v51 = vmul.f32 1.442695, %v527_v29  ;;  %v584_v17 = vmul.f32 3.125, %v705_v16 }
 0x36a   :  { %787 = vpow2.f32 %v531_v51  ;;  %v1027_v53 = vpop.xlane.xlu1 %522 }
 0x36b   :  { %v529_v55 = vsub.f32 %v501_v43, %v1027_v53  ;;  %vm565_vm4 = vcmp.ge.f32.partialorder %v513_v1, %v1027_v53 }
 0x36c   :  { %v707_v20 = vsel %vm565_vm4, 1.0, %v851_v2 }
 0x36d   :  { %v535_v56 = vmul.f32 1.442695, %v529_v55  ;;  %v586_v21 = vmul.f32 3.125, %v707_v20 }
 0x36e   :  { %v1030_v57 = vpop.xlane.xlu1 %525 }
 0x36f   :  { %789 = vpow2.f32 %v535_v56  ;;  %v530_v58 = vsub.f32 %v502_v45, %v1030_v57  ;;  %vm566_vm5 = vcmp.ge.f32.partialorder %v514_v36, %v1030_v57 }
 0x370   :  { %v708_v27 = vsel %vm566_vm5, 1.0, %v851_v2 }
 0x371   :  { %v537_v59 = vmul.f32 1.442695, %v530_v58  ;;  %v587_v45 = vmul.f32 3.125, %v708_v27 }
 0x373   :  { %791 = vpow2.f32 %v537_v59 }
 0x375   :  { %v786_v60 = vpop.eup %785 }
 0x376   :  { %v542_v61 = vsel %vm283_vm10, %v786_v60, 0.0 }
 0x377   :  { %v788_v0 = vpop.eup %787  ;;  %543 = vadd.xlane.f32.xlu1 %v542_v61 }
 0x378   :  { %v539_v3 = vsel %vm283_vm10, %v788_v0, 0.0 }
 0x37b   :  { %540 = vadd.xlane.f32.xlu1 %v539_v3 }
 0x37c   :  { %v790_v4 = vpop.eup %789 }
 0x37d   :  { %v545_v54 = vsel %vm283_vm10, %v790_v4, 0.0 }
 0x37f   :  { %546 = vadd.xlane.f32.xlu1 %v545_v54 }
 0x380   :  { %v792_v7 = vpop.eup %791 }
 0x381   :  { %v548_v9 = vsel %vm283_vm10, %v792_v7, 0.0 }
 0x382   :  { %549 = vadd.xlane.f32.xlu0 %v548_v9 }
 0x390   :  { %610 = vperm.xlu1 %766, %v584_v17  }
 0x394   :  { %615 = vperm.xlu1 %766, %v585_v18  }
 0x398   :  { %620 = vperm.xlu1 %766, %v586_v21  }
 0x400   :  { %v544_v38 = vpop.xlane.xlu1 %543 }
 0x401   :  { %793 = vlog2.f32 %v544_v38 }
 0x404   :  { %v541_v42 = vpop.xlane.xlu1 %540 }
 0x405   :  { %795 = vlog2.f32 %v541_v42 }
 0x408   :  { %v547_v25 = vpop.xlane.xlu1 %546 }
 0x409   :  { %797 = vlog2.f32 %v547_v25 }
 0x40b   :  { %v550_v26 = vpop.xlane.xlu0 %549 }
 0x40c   :  { %799 = vlog2.f32 %v550_v26 }
 0x40e   :  { %v794_v30 = vpop.eup %793 }
 0x40f   :  { %v554_v31 = vmul.f32 0.6931472, %v794_v30 }
 0x411   :  { %v560_v34 = vadd.f32 %v554_v31, %v520_v47 }
 0x412   :  { %v796_v35 = vpop.eup %795 }
 0x413   :  { %v552_v24 = vmul.f32 0.6931472, %v796_v35  ;;  %v577_v10 = vsub.f32 %v560_v34, %v512_v5 }
 0x415   :  { %v559_v37 = vadd.f32 %v552_v24, %v1024_v49  ;;  %v581_v22 = vmul.f32 0.03125, %v577_v10  ;;  %v611_v49 = vpop.permute.xlu1 %610 }
 0x416   :  { %v798_v11 = vpop.eup %797 }
 0x417   :  { %v556_v39 = vmul.f32 0.6931472, %v798_v11  ;;  %595 = vperm.xlu0 %765, %v581_v22   ;;  %v576_v40 = vsub.f32 %v559_v37, %v511_v63 }
 0x419   :  { %v800_v23 = vpop.eup %799  ;;  %v561_v41 = vadd.f32 %v556_v39, %v1027_v53  ;;  %v580_v43 = vmul.f32 0.03125, %v576_v40  ;;  %v616_v50 = vpop.permute.xlu1 %615 }
 0x41a   :  { %v558_v28 = vmul.f32 0.6931472, %v800_v23 }
 0x41b   :  { %590 = vperm.xlu1 %766, %v580_v43   ;;  %v578_v44 = vsub.f32 %v561_v41, %v513_v1 }
 0x41c   :  { %v562_v32 = vadd.f32 %v558_v28, %v1030_v57 }
 0x41d   :  { %v582_v46 = vmul.f32 0.03125, %v578_v44  ;;  %v621_v29 = vpop.permute.xlu1 %620 }
 0x41e   :  { %v579_v47 = vsub.f32 %v562_v32, %v514_v36 }
 0x41f   :  { %625 = vperm.xlu1 %766, %v587_v45   ;;  %600 = vperm.xlu0 %765, %v582_v46  }
 0x420   :  { %v583_v48 = vmul.f32 0.03125, %v579_v47 }
 0x423   :  { %605 = vperm.xlu0 %765, %v583_v48  }
 0x492   :  { %v596_v51 = vpop.permute.xlu0 %595 }
 0x493   :  { %v629_v55 = vsel %vm575_vm6, %v596_v51, %v616_v50 }
 0x494   :  { %v634_v59 = vsel %vm632_vm7, %v629_v55, 0.0 }
 0x496   :  { %v591_v53 = vpop.permute.xlu1 %590 }
 0x497   :  { %v628_v2 = vsel %vm575_vm6, %v591_v53, %v611_v49 }
 0x498   :  { %v633_v56 = vsel %vm632_vm7, %v628_v2, 0.0 }
 0x499   :  { %v635_v61 = vadd.f32 %v634_v59, %v633_v56 }
 0x49a   :  { %v601_v57 = vpop.permute.xlu0 %600  ;;  %v626_v0 = vpop.permute.xlu1 %625 }
 0x49b   :  { %v630_v58 = vsel %vm575_vm6, %v601_v57, %v621_v29 }
 0x49c   :  { %v636_v60 = vsel %vm632_vm7, %v630_v58, 0.0 }
 0x49d   :  { %v637_v4 = vadd.f32 %v636_v60, %v635_v61 }
 0x49e   :  { %v606_v3 = vpop.permute.xlu0 %605 }
 0x49f   :  { %v631_v52 = vsel %vm575_vm6, %v606_v3, %v626_v0 }
 0x4a0   :  { %v638_v54 = vsel %vm632_vm7, %v631_v52, 0.0 }
 0x4a1   :  { %v639_v7 = vadd.f32 %v638_v54, %v637_v4 }
 0x4a3   :  { %v640_v9 = vrot.slane %v639_v7, 4 }
 0x4a5   :  { %v641_v12 = vadd.f32 %v640_v9, %v639_v7 }
 0x4a7   :  { %v642_v62 = vrot.slane %v641_v12, 2 }
 0x4a9   :  { %v643_v13 = vadd.f32 %v642_v62, %v641_v12 }
 0x4ab   :  { %v644_v14 = vrot.slane %v643_v13, 1 }
 0x4ad   :  { %v645_v63 = vadd.f32 %v644_v14, %v643_v13 }
 0x4af   :  { %v661_v5 = vsel %vm660_vm8, %v645_v63, 0.0  ;;  %v646_v15 = vsel %vm575_vm6, %v645_v63, 0.0 }
 0x4b0   :  { %v662_v16 = vsel %vm647_vm9, %v661_v5, 0.0  ;;  %v648_v1 = vsel %vm647_vm9, %v646_v15, 0.0 }
 0x4b1   :  { %663 = vadd.xlane.f32.xlu1 %v662_v16  ;;  %649 = vadd.xlane.f32.xlu0 %v648_v1 }
 0x53a   :  { %v664_v17 = vpop.xlane.xlu1 %663  ;;  %v650_v19 = vpop.xlane.xlu0 %649 }
 0x53b   :  { %v665_v18 = vrot.slane %v664_v17, 4  ;;  %v651_v20 = vrot.slane %v650_v19, 4 }
 0x53d   :  { %v666_v21 = vadd.f32 %v665_v18, %v664_v17  ;;  %v652_v38 = vadd.f32 %v651_v20, %v650_v19 }
 0x53f   :  { %v667_v42 = vrot.slane %v666_v21, 2  ;;  %v653_v25 = vrot.slane %v652_v38, 2 }
 0x541   :  { %v668_v26 = vadd.f32 %v667_v42, %v666_v21  ;;  %v654_v8 = vadd.f32 %v653_v25, %v652_v38 }
 0x543   :  { %v655_v30 = vrot.slane %v654_v8, 1  ;;  %v669_v31 = vrot.slane %v668_v26, 1 }
 0x545   :  { %v656_v33 = vadd.f32 %v655_v30, %v654_v8  ;;  %v670_v34 = vadd.f32 %v669_v31, %v668_v26 }
 0x547   :  { %753 = vpush %v656_v33 }
 0x548   :  { %755 = vpush %v670_v34 }
 0x578   :  { %s754_s21 = spop %753 }
 0x579   :  { %659 = sst [smem:[#allocation7]] %s754_s21  ;;  %s756_s22 = spop %755 }
 0x57a   :  { %673 = sst [smem:[#allocation7 + $0x1]] %s756_s22 }
 0x57b   :  { %681 = dma.smem_to_hbm %s854_s23, 16, %s1076_s2, [#allocation4]  }
 0x57c   :  { %845 = dma.done.wait [#allocation4], 16  }
 0x57d   :  { %846 = vsyncadd [#allocation4], 4294967280 }
 0x57e   :  { %685 = sfence }
 0x57f   :  { %686 = vsyncpa [#allocation3], 1 }
 0x580   :  { %687 = vsyncpa [#allocation4], 1 }
 0x581   :  { %688 = vsyncpa [#allocation5], 1 }

</bundles_post_ra>
